<compile_context>
chip_gen: v7x
topology: tpu7x:2x2x1
jax: 0.10.0
libtpu: 0.0.40
codegen_flags: <defaults>
</compile_context>

<pallas_src>
import jax
import jax.numpy as jnp
from jax.experimental import pallas as pl
from jax.experimental.pallas import tpu as pltpu


_CL = 256  # inner lane-chunk width (multiple of the 128-lane vreg width)


def _mlp_kernel(x_ref, w1b_ref, b1b_ref, w2b_ref, b2_ref, o_ref):
    # Shapes (all float32):
    #   x_ref  : (6,  TB)      feature-major input tile (batch on lanes)
    #   w1b_ref: (6, 36, CL)   fc1 weight columns, pre-broadcast across CL lanes
    #   b1b_ref: (36, CL)      fc1 bias, pre-broadcast across CL lanes
    #   w2b_ref: (2, 36, CL)   fc2 weight rows, pre-broadcast across CL lanes
    #   b2_ref : (2, 1)        fc2 bias
    #   o_ref  : (2,  TB)      feature-major output tile
    tb = x_ref.shape[1]
    cl = b1b_ref.shape[1]
    b1b = b1b_ref[...]                                   # (36, CL), loop-invariant

    # Static 256-lane chunks keep the (36, CL) intermediates in vregs (no VMEM
    # bouncing); static slice offsets are free and vreg-aligned.
    for c in range(tb // cl):
        lo = c * cl
        xs = x_ref[:, lo:lo + cl]                        # (6, CL)

        # fc1: acc[j, :] = b1[j] + sum_k W1[j, k] * x[k, :]
        # Weight operand is already (36, CL) (vld from VMEM-resident block);
        # only the x row needs a sublane broadcast.
        acc = b1b + w1b_ref[0] * xs[0:1, :]
        for k in range(1, 6):
            acc = acc + w1b_ref[k] * xs[k:k + 1, :]

        # tanh on the EUP, kept in f32 for the 1e-5 tolerance.
        h = jnp.tanh(acc)                                # (36, CL)

        # fc2: y[i, :] = b2[i] + sum_j W2[i, j] * h[j, :]
        y0 = jnp.sum(h * w2b_ref[0], axis=0, keepdims=True) + b2_ref[0:1, :]
        y1 = jnp.sum(h * w2b_ref[1], axis=0, keepdims=True) + b2_ref[1:2, :]
        o_ref[0:1, lo:lo + cl] = y0                      # dense lane stores
        o_ref[1:2, lo:lo + cl] = y1


def _round_up(n, m):
    return ((n + m - 1) // m) * m


def net_forward(x, w1, b1, w2, b2, *, tb=2048):
    """Pallas implementation of Net.forward (PyTorch-native weight layouts).

    x  : [B, 6]   float32
    w1 : [36, 6]  float32   (fc1.weight, [out, in])
    b1 : [36]     float32
    w2 : [2, 36]  float32   (fc2.weight, [out, in])
    b2 : [2]      float32
    returns [B, 2] float32
    """
    B, F = x.shape
    assert F == 6 and w1.shape == (36, 6) and w2.shape == (2, 36)

    # Batch tile on the lane axis: a multiple of the 256-lane inner chunk.
    tb = max(_CL, min(_round_up(tb, _CL), _round_up(B, _CL)))
    # Keep >= 2 grid tiles when the batch allows it, so ("parallel",) can
    # actually split work across v7x's two TensorCores (no-op on v5e/v6e).
    if pl.cdiv(B, tb) < 2 and tb > _CL:
        tb = max(_CL, _round_up(pl.cdiv(B, 2), _CL))
    n_tiles = pl.cdiv(B, tb)

    # Feature-major (lane-dense) operands.  Weight/bias pre-broadcasts total a
    # few hundred KiB, are built once here, and stay VMEM-resident across all
    # grid steps via constant index_maps.
    xt = x.T                                                   # (6, B)
    w1b = jnp.broadcast_to(w1.T[:, :, None], (6, 36, _CL))     # w1b[k,j,:] = W1[j,k]
    b1b = jnp.broadcast_to(b1[:, None], (36, _CL))
    w2b = jnp.broadcast_to(w2[:, :, None], (2, 36, _CL))       # w2b[i,j,:] = W2[i,j]
    b2c = b2.reshape(2, 1)

    out_t = pl.pallas_call(
        _mlp_kernel,
        out_shape=jax.ShapeDtypeStruct((2, B), jnp.float32),
        grid=(n_tiles,),
        in_specs=[
            pl.BlockSpec((6, tb), lambda i: (0, i)),           # x^T: tiled over batch lanes
            pl.BlockSpec((6, 36, _CL), lambda i: (0, 0, 0)),   # w1b: VMEM-resident
            pl.BlockSpec((36, _CL), lambda i: (0, 0)),         # b1b: VMEM-resident
            pl.BlockSpec((2, 36, _CL), lambda i: (0, 0, 0)),   # w2b: VMEM-resident
            pl.BlockSpec((2, 1), lambda i: (0, 0)),            # b2 : VMEM-resident
        ],
        out_specs=pl.BlockSpec((2, tb), lambda i: (0, i)),
        compiler_params=pltpu.CompilerParams(
            dimension_semantics=("parallel",)),
        cost_estimate=pl.CostEstimate(
            flops=620 * B, transcendentals=36 * B, bytes_accessed=32 * B),
    )(xt, w1b, b1b, w2b, b2c)

    return out_t.T


def init_params(key):
    """PyTorch nn.Linear default init: U(-1/sqrt(fan_in), 1/sqrt(fan_in)),
    in the native [out, in] weight layouts."""
    k1, k2, k3, k4 = jax.random.split(key, 4)
    lim1 = 1.0 / jnp.sqrt(6.0)
    lim2 = 1.0 / jnp.sqrt(36.0)
    w1 = jax.random.uniform(k1, (36, 6), jnp.float32, -lim1, lim1)
    b1 = jax.random.uniform(k2, (36,), jnp.float32, -lim1, lim1)
    w2 = jax.random.uniform(k3, (2, 36), jnp.float32, -lim2, lim2)
    b2 = jax.random.uniform(k4, (2,), jnp.float32, -lim2, lim2)
    return w1, b1, w2, b2


if __name__ == "__main__":
    key = jax.random.PRNGKey(0)
    kx, kp = jax.random.split(key)

    # B chosen so the grid has 2 tiles with a ragged final block (488 valid
    # lanes) — exercises both the full-tile and edge-block paths.
    B = 1000
    x = jax.random.normal(kx, (B, 6), jnp.float32)
    w1, b1, w2, b2 = init_params(kp)

    out = net_forward(x, w1, b1, w2, b2, tb=512)
    out = jax.block_until_ready(out)

    # Reference: same math as the PyTorch forward with native weight layouts.
    ref = jnp.tanh(x @ w1.T + b1) @ w2.T + b2
    assert out.shape == (B, 2)
    assert jnp.allclose(out, ref, atol=1e-5, rtol=1e-5)

    print("KERNEL_OK")
</pallas_src>

<mosaic_0001>
module attributes {stable_mosaic.version = 11 : i64} {
  func.func @_mlp_kernel(%arg0: i32, %arg1: memref<6x512xf32, #tpu.memory_space<vmem>>, %arg2: memref<6x36x256xf32, #tpu.memory_space<vmem>>, %arg3: memref<36x256xf32, #tpu.memory_space<vmem>>, %arg4: memref<2x36x256xf32, #tpu.memory_space<vmem>>, %arg5: memref<2x1xf32, #tpu.memory_space<vmem>>, %arg6: memref<2x512xf32, #tpu.memory_space<vmem>>) attributes {dimension_semantics = [#tpu.dimension_semantics<parallel>], iteration_bounds = array<i64: 2>, scalar_prefetch = 0 : i64, scratch_operands = 0 : i64, tpu.core_type = #tpu.core_type<tc>, window_params = [{transform_indices = @transform_0, window_bounds = array<i64: 6, 512>}, {pipeline_mode = #tpu.pipeline_mode<synchronous>, transform_indices = @transform_1, window_bounds = array<i64: 6, 36, 256>}, {pipeline_mode = #tpu.pipeline_mode<synchronous>, transform_indices = @transform_2, window_bounds = array<i64: 36, 256>}, {pipeline_mode = #tpu.pipeline_mode<synchronous>, transform_indices = @transform_3, window_bounds = array<i64: 2, 36, 256>}, {pipeline_mode = #tpu.pipeline_mode<synchronous>, transform_indices = @transform_4, window_bounds = array<i64: 2, 1>}, {transform_indices = @transform_5, window_bounds = array<i64: 2, 512>}]} {
    %c0 = arith.constant 0 : index
    %c0_0 = arith.constant 0 : index
    %0 = vector.load %arg3[%c0, %c0_0] : memref<36x256xf32, #tpu.memory_space<vmem>>, vector<36x256xf32>
    %c0_1 = arith.constant 0 : index
    %c0_2 = arith.constant 0 : index
    %1 = vector.load %arg1[%c0_1, %c0_2] : memref<6x512xf32, #tpu.memory_space<vmem>>, vector<6x256xf32>
    %c0_3 = arith.constant 0 : index
    %c0_4 = arith.constant 0 : index
    %c0_5 = arith.constant 0 : index
    %2 = vector.load %arg2[%c0_3, %c0_4, %c0_5] : memref<6x36x256xf32, #tpu.memory_space<vmem>>, vector<1x36x256xf32>
    %3 = vector.shape_cast %2 : vector<1x36x256xf32> to vector<36x256xf32>
    %4 = vector.extract_strided_slice %1 {offsets = [0, 0], sizes = [1, 256], strides = [1, 1]} : vector<6x256xf32> to vector<1x256xf32>
    %5 = vector.broadcast %4 : vector<1x256xf32> to vector<36x256xf32>
    %6 = arith.mulf %3, %5 : vector<36x256xf32>
    %7 = arith.addf %0, %6 : vector<36x256xf32>
    %c1 = arith.constant 1 : index
    %c0_6 = arith.constant 0 : index
    %c0_7 = arith.constant 0 : index
    %8 = vector.load %arg2[%c1, %c0_6, %c0_7] : memref<6x36x256xf32, #tpu.memory_space<vmem>>, vector<1x36x256xf32>
    %9 = vector.shape_cast %8 : vector<1x36x256xf32> to vector<36x256xf32>
    %10 = vector.extract_strided_slice %1 {offsets = [1, 0], sizes = [1, 256], strides = [1, 1]} : vector<6x256xf32> to vector<1x256xf32>
    %11 = vector.broadcast %10 : vector<1x256xf32> to vector<36x256xf32>
    %12 = arith.mulf %9, %11 : vector<36x256xf32>
    %13 = arith.addf %7, %12 : vector<36x256xf32>
    %c2 = arith.constant 2 : index
    %c0_8 = arith.constant 0 : index
    %c0_9 = arith.constant 0 : index
    %14 = vector.load %arg2[%c2, %c0_8, %c0_9] : memref<6x36x256xf32, #tpu.memory_space<vmem>>, vector<1x36x256xf32>
    %15 = vector.shape_cast %14 : vector<1x36x256xf32> to vector<36x256xf32>
    %16 = vector.extract_strided_slice %1 {offsets = [2, 0], sizes = [1, 256], strides = [1, 1]} : vector<6x256xf32> to vector<1x256xf32>
    %17 = vector.broadcast %16 : vector<1x256xf32> to vector<36x256xf32>
    %18 = arith.mulf %15, %17 : vector<36x256xf32>
    %19 = arith.addf %13, %18 : vector<36x256xf32>
    %c3 = arith.constant 3 : index
    %c0_10 = arith.constant 0 : index
    %c0_11 = arith.constant 0 : index
    %20 = vector.load %arg2[%c3, %c0_10, %c0_11] : memref<6x36x256xf32, #tpu.memory_space<vmem>>, vector<1x36x256xf32>
    %21 = vector.shape_cast %20 : vector<1x36x256xf32> to vector<36x256xf32>
    %22 = vector.extract_strided_slice %1 {offsets = [3, 0], sizes = [1, 256], strides = [1, 1]} : vector<6x256xf32> to vector<1x256xf32>
    %23 = vector.broadcast %22 : vector<1x256xf32> to vector<36x256xf32>
    %24 = arith.mulf %21, %23 : vector<36x256xf32>
    %25 = arith.addf %19, %24 : vector<36x256xf32>
    %c4 = arith.constant 4 : index
    %c0_12 = arith.constant 0 : index
    %c0_13 = arith.constant 0 : index
    %26 = vector.load %arg2[%c4, %c0_12, %c0_13] : memref<6x36x256xf32, #tpu.memory_space<vmem>>, vector<1x36x256xf32>
    %27 = vector.shape_cast %26 : vector<1x36x256xf32> to vector<36x256xf32>
    %28 = vector.extract_strided_slice %1 {offsets = [4, 0], sizes = [1, 256], strides = [1, 1]} : vector<6x256xf32> to vector<1x256xf32>
    %29 = vector.broadcast %28 : vector<1x256xf32> to vector<36x256xf32>
    %30 = arith.mulf %27, %29 : vector<36x256xf32>
    %31 = arith.addf %25, %30 : vector<36x256xf32>
    %c5 = arith.constant 5 : index
    %c0_14 = arith.constant 0 : index
    %c0_15 = arith.constant 0 : index
    %32 = vector.load %arg2[%c5, %c0_14, %c0_15] : memref<6x36x256xf32, #tpu.memory_space<vmem>>, vector<1x36x256xf32>
    %33 = vector.shape_cast %32 : vector<1x36x256xf32> to vector<36x256xf32>
    %34 = vector.extract_strided_slice %1 {offsets = [5, 0], sizes = [1, 256], strides = [1, 1]} : vector<6x256xf32> to vector<1x256xf32>
    %35 = vector.broadcast %34 : vector<1x256xf32> to vector<36x256xf32>
    %36 = arith.mulf %33, %35 : vector<36x256xf32>
    %37 = arith.addf %31, %36 : vector<36x256xf32>
    %38 = math.tanh %37 : vector<36x256xf32>
    %c0_16 = arith.constant 0 : index
    %c0_17 = arith.constant 0 : index
    %c0_18 = arith.constant 0 : index
    %39 = vector.load %arg4[%c0_16, %c0_17, %c0_18] : memref<2x36x256xf32, #tpu.memory_space<vmem>>, vector<1x36x256xf32>
    %40 = vector.shape_cast %39 : vector<1x36x256xf32> to vector<36x256xf32>
    %41 = arith.mulf %38, %40 : vector<36x256xf32>
    %cst = arith.constant dense<0.000000e+00> : vector<256xf32>
    %42 = vector.multi_reduction <add>, %41, %cst [0] : vector<36x256xf32> to vector<256xf32>
    %43 = vector.shape_cast %42 : vector<256xf32> to vector<1x256xf32>
    %c0_19 = arith.constant 0 : index
    %c0_20 = arith.constant 0 : index
    %44 = vector.load %arg5[%c0_19, %c0_20] : memref<2x1xf32, #tpu.memory_space<vmem>>, vector<1x1xf32>
    %45 = vector.broadcast %44 : vector<1x1xf32> to vector<1x256xf32>
    %46 = arith.addf %43, %45 : vector<1x256xf32>
    %c1_21 = arith.constant 1 : index
    %c0_22 = arith.constant 0 : index
    %c0_23 = arith.constant 0 : index
    %47 = vector.load %arg4[%c1_21, %c0_22, %c0_23] : memref<2x36x256xf32, #tpu.memory_space<vmem>>, vector<1x36x256xf32>
    %48 = vector.shape_cast %47 : vector<1x36x256xf32> to vector<36x256xf32>
    %49 = arith.mulf %38, %48 : vector<36x256xf32>
    %cst_24 = arith.constant dense<0.000000e+00> : vector<256xf32>
    %50 = vector.multi_reduction <add>, %49, %cst_24 [0] : vector<36x256xf32> to vector<256xf32>
    %51 = vector.shape_cast %50 : vector<256xf32> to vector<1x256xf32>
    %c1_25 = arith.constant 1 : index
    %c0_26 = arith.constant 0 : index
    %52 = vector.load %arg5[%c1_25, %c0_26] : memref<2x1xf32, #tpu.memory_space<vmem>>, vector<1x1xf32>
    %53 = vector.broadcast %52 : vector<1x1xf32> to vector<1x256xf32>
    %54 = arith.addf %51, %53 : vector<1x256xf32>
    %c0_27 = arith.constant 0 : index
    %c0_28 = arith.constant 0 : index
    %55 = vector.load %arg6[%c0_27, %c0_28] : memref<2x512xf32, #tpu.memory_space<vmem>>, vector<1x256xf32>
    tpu.vector_store %arg6[%c0_27, %c0_28], %46 {strides = array<i32>} : memref<2x512xf32, #tpu.memory_space<vmem>>, vector<1x256xf32>,
    %c1_29 = arith.constant 1 : index
    %c0_30 = arith.constant 0 : index
    %56 = vector.load %arg6[%c1_29, %c0_30] : memref<2x512xf32, #tpu.memory_space<vmem>>, vector<1x256xf32>
    tpu.vector_store %arg6[%c1_29, %c0_30], %54 {strides = array<i32>} : memref<2x512xf32, #tpu.memory_space<vmem>>, vector<1x256xf32>,
    %c0_31 = arith.constant 0 : index
    %c256 = arith.constant 256 : index
    %57 = vector.load %arg1[%c0_31, %c256] : memref<6x512xf32, #tpu.memory_space<vmem>>, vector<6x256xf32>
    %c0_32 = arith.constant 0 : index
    %c0_33 = arith.constant 0 : index
    %c0_34 = arith.constant 0 : index
    %58 = vector.load %arg2[%c0_32, %c0_33, %c0_34] : memref<6x36x256xf32, #tpu.memory_space<vmem>>, vector<1x36x256xf32>
    %59 = vector.shape_cast %58 : vector<1x36x256xf32> to vector<36x256xf32>
    %60 = vector.extract_strided_slice %57 {offsets = [0, 0], sizes = [1, 256], strides = [1, 1]} : vector<6x256xf32> to vector<1x256xf32>
    %61 = vector.broadcast %60 : vector<1x256xf32> to vector<36x256xf32>
    %62 = arith.mulf %59, %61 : vector<36x256xf32>
    %63 = arith.addf %0, %62 : vector<36x256xf32>
    %c1_35 = arith.constant 1 : index
    %c0_36 = arith.constant 0 : index
    %c0_37 = arith.constant 0 : index
    %64 = vector.load %arg2[%c1_35, %c0_36, %c0_37] : memref<6x36x256xf32, #tpu.memory_space<vmem>>, vector<1x36x256xf32>
    %65 = vector.shape_cast %64 : vector<1x36x256xf32> to vector<36x256xf32>
    %66 = vector.extract_strided_slice %57 {offsets = [1, 0], sizes = [1, 256], strides = [1, 1]} : vector<6x256xf32> to vector<1x256xf32>
    %67 = vector.broadcast %66 : vector<1x256xf32> to vector<36x256xf32>
    %68 = arith.mulf %65, %67 : vector<36x256xf32>
    %69 = arith.addf %63, %68 : vector<36x256xf32>
    %c2_38 = arith.constant 2 : index
    %c0_39 = arith.constant 0 : index
    %c0_40 = arith.constant 0 : index
    %70 = vector.load %arg2[%c2_38, %c0_39, %c0_40] : memref<6x36x256xf32, #tpu.memory_space<vmem>>, vector<1x36x256xf32>
    %71 = vector.shape_cast %70 : vector<1x36x256xf32> to vector<36x256xf32>
    %72 = vector.extract_strided_slice %57 {offsets = [2, 0], sizes = [1, 256], strides = [1, 1]} : vector<6x256xf32> to vector<1x256xf32>
    %73 = vector.broadcast %72 : vector<1x256xf32> to vector<36x256xf32>
    %74 = arith.mulf %71, %73 : vector<36x256xf32>
    %75 = arith.addf %69, %74 : vector<36x256xf32>
    %c3_41 = arith.constant 3 : index
    %c0_42 = arith.constant 0 : index
    %c0_43 = arith.constant 0 : index
    %76 = vector.load %arg2[%c3_41, %c0_42, %c0_43] : memref<6x36x256xf32, #tpu.memory_space<vmem>>, vector<1x36x256xf32>
    %77 = vector.shape_cast %76 : vector<1x36x256xf32> to vector<36x256xf32>
    %78 = vector.extract_strided_slice %57 {offsets = [3, 0], sizes = [1, 256], strides = [1, 1]} : vector<6x256xf32> to vector<1x256xf32>
    %79 = vector.broadcast %78 : vector<1x256xf32> to vector<36x256xf32>
    %80 = arith.mulf %77, %79 : vector<36x256xf32>
    %81 = arith.addf %75, %80 : vector<36x256xf32>
    %c4_44 = arith.constant 4 : index
    %c0_45 = arith.constant 0 : index
    %c0_46 = arith.constant 0 : index
    %82 = vector.load %arg2[%c4_44, %c0_45, %c0_46] : memref<6x36x256xf32, #tpu.memory_space<vmem>>, vector<1x36x256xf32>
    %83 = vector.shape_cast %82 : vector<1x36x256xf32> to vector<36x256xf32>
    %84 = vector.extract_strided_slice %57 {offsets = [4, 0], sizes = [1, 256], strides = [1, 1]} : vector<6x256xf32> to vector<1x256xf32>
    %85 = vector.broadcast %84 : vector<1x256xf32> to vector<36x256xf32>
    %86 = arith.mulf %83, %85 : vector<36x256xf32>
    %87 = arith.addf %81, %86 : vector<36x256xf32>
    %c5_47 = arith.constant 5 : index
    %c0_48 = arith.constant 0 : index
    %c0_49 = arith.constant 0 : index
    %88 = vector.load %arg2[%c5_47, %c0_48, %c0_49] : memref<6x36x256xf32, #tpu.memory_space<vmem>>, vector<1x36x256xf32>
    %89 = vector.shape_cast %88 : vector<1x36x256xf32> to vector<36x256xf32>
    %90 = vector.extract_strided_slice %57 {offsets = [5, 0], sizes = [1, 256], strides = [1, 1]} : vector<6x256xf32> to vector<1x256xf32>
    %91 = vector.broadcast %90 : vector<1x256xf32> to vector<36x256xf32>
    %92 = arith.mulf %89, %91 : vector<36x256xf32>
    %93 = arith.addf %87, %92 : vector<36x256xf32>
    %94 = math.tanh %93 : vector<36x256xf32>
    %c0_50 = arith.constant 0 : index
    %c0_51 = arith.constant 0 : index
    %c0_52 = arith.constant 0 : index
    %95 = vector.load %arg4[%c0_50, %c0_51, %c0_52] : memref<2x36x256xf32, #tpu.memory_space<vmem>>, vector<1x36x256xf32>
    %96 = vector.shape_cast %95 : vector<1x36x256xf32> to vector<36x256xf32>
    %97 = arith.mulf %94, %96 : vector<36x256xf32>
    %cst_53 = arith.constant dense<0.000000e+00> : vector<256xf32>
    %98 = vector.multi_reduction <add>, %97, %cst_53 [0] : vector<36x256xf32> to vector<256xf32>
    %99 = vector.shape_cast %98 : vector<256xf32> to vector<1x256xf32>
    %c0_54 = arith.constant 0 : index
    %c0_55 = arith.constant 0 : index
    %100 = vector.load %arg5[%c0_54, %c0_55] : memref<2x1xf32, #tpu.memory_space<vmem>>, vector<1x1xf32>
    %101 = vector.broadcast %100 : vector<1x1xf32> to vector<1x256xf32>
    %102 = arith.addf %99, %101 : vector<1x256xf32>
    %c1_56 = arith.constant 1 : index
    %c0_57 = arith.constant 0 : index
    %c0_58 = arith.constant 0 : index
    %103 = vector.load %arg4[%c1_56, %c0_57, %c0_58] : memref<2x36x256xf32, #tpu.memory_space<vmem>>, vector<1x36x256xf32>
    %104 = vector.shape_cast %103 : vector<1x36x256xf32> to vector<36x256xf32>
    %105 = arith.mulf %94, %104 : vector<36x256xf32>
    %cst_59 = arith.constant dense<0.000000e+00> : vector<256xf32>
    %106 = vector.multi_reduction <add>, %105, %cst_59 [0] : vector<36x256xf32> to vector<256xf32>
    %107 = vector.shape_cast %106 : vector<256xf32> to vector<1x256xf32>
    %c1_60 = arith.constant 1 : index
    %c0_61 = arith.constant 0 : index
    %108 = vector.load %arg5[%c1_60, %c0_61] : memref<2x1xf32, #tpu.memory_space<vmem>>, vector<1x1xf32>
    %109 = vector.broadcast %108 : vector<1x1xf32> to vector<1x256xf32>
    %110 = arith.addf %107, %109 : vector<1x256xf32>
    %c0_62 = arith.constant 0 : index
    %c256_63 = arith.constant 256 : index
    %111 = vector.load %arg6[%c0_62, %c256_63] : memref<2x512xf32, #tpu.memory_space<vmem>>, vector<1x256xf32>
    tpu.vector_store %arg6[%c0_62, %c256_63], %102 {strides = array<i32>} : memref<2x512xf32, #tpu.memory_space<vmem>>, vector<1x256xf32>,
    %c1_64 = arith.constant 1 : index
    %c256_65 = arith.constant 256 : index
    %112 = vector.load %arg6[%c1_64, %c256_65] : memref<2x512xf32, #tpu.memory_space<vmem>>, vector<1x256xf32>
    tpu.vector_store %arg6[%c1_64, %c256_65], %110 {strides = array<i32>} : memref<2x512xf32, #tpu.memory_space<vmem>>, vector<1x256xf32>,
    return
  }
  func.func @transform_0(%arg0: i32) -> (i32, i32) {
    %c0_i32 = arith.constant 0 : i32
    %c0_i32_0 = arith.constant 0 : i32
    return %c0_i32, %arg0 : i32, i32
  }
  func.func @transform_1(%arg0: i32) -> (i32, i32, i32) {
    %c0_i32 = arith.constant 0 : i32
    %c0_i32_0 = arith.constant 0 : i32
    %c0_i32_1 = arith.constant 0 : i32
    %c0_i32_2 = arith.constant 0 : i32
    return %c0_i32, %c0_i32_0, %c0_i32_1 : i32, i32, i32
  }
  func.func @transform_2(%arg0: i32) -> (i32, i32) {
    %c0_i32 = arith.constant 0 : i32
    %c0_i32_0 = arith.constant 0 : i32
    %c0_i32_1 = arith.constant 0 : i32
    return %c0_i32, %c0_i32_0 : i32, i32
  }
  func.func @transform_3(%arg0: i32) -> (i32, i32, i32) {
    %c0_i32 = arith.constant 0 : i32
    %c0_i32_0 = arith.constant 0 : i32
    %c0_i32_1 = arith.constant 0 : i32
    %c0_i32_2 = arith.constant 0 : i32
    return %c0_i32, %c0_i32_0, %c0_i32_1 : i32, i32, i32
  }
  func.func @transform_4(%arg0: i32) -> (i32, i32) {
    %c0_i32 = arith.constant 0 : i32
    %c0_i32_0 = arith.constant 0 : i32
    %c0_i32_1 = arith.constant 0 : i32
    return %c0_i32, %c0_i32_0 : i32, i32
  }
  func.func @transform_5(%arg0: i32) -> (i32, i32) {
    %c0_i32 = arith.constant 0 : i32
    %c0_i32_0 = arith.constant 0 : i32
    return %c0_i32, %arg0 : i32, i32
  }
}

</mosaic_0001>

<bundles_post_ra>
// kernel: tpu_custom_call.1
= control target key start
LH: loop header
LB: loop body
LE: loop exit
PB: predicated region body
PF: predicated region fallthrough
CT: control target
= control target key end

     0   :  { %10 = vsyncpa [#allocation3], 0  ;;  %s2097_s0 = inlined_call_operand.vmem [shape: f32[6,1000], index: 0, kind: input, shape index: {}]   ;;  %s2098_s1 = inlined_call_operand.hbm [shape: f32[6,36,256], index: 1, kind: input, shape index: {}]   ;;  %s2099_s2 = inlined_call_operand.vmem [shape: f32[36,256], index: 2, kind: input, shape index: {}]   ;;  %s2100_s3 = inlined_call_operand.vmem [shape: f32[2,36,256], index: 3, kind: input, shape index: {}]   ;;  %s2101_s4 = inlined_call_operand.vmem [shape: f32[2,1], index: 4, kind: input, shape index: {}]   ;;  %s2102_s5 = inlined_call_operand.hbm [shape: f32[2,1000], index: 5, kind: output, shape index: {}]  }
   0x1   :  { %11 = vsyncpa [#allocation4], 0 }
   0x2   :  { %13 = vsyncpa [#allocation4 + $0x1], 0  ;;  %s1373_s18 = smov 0   ;;  %s1375_s19 = smov 0  }
   0x3   :  { %s1377_s20 = smov 0   ;;  %s1379_s21 = smov 0  }
   0x4 LB: > { %s1394_s22 = sadd.s32 4294967295, %s1335_s21   ;;  %s1107_s23 = sadd.s32 4294967294, %s1335_s21   ;;  %s1335_s21 = sphi %s1379_s21, %s2257_s21   ;;  %s1331_s20 = sphi %s1377_s20, %s2256_s20   ;;  %s1327_s19 = sphi %s1375_s19, %s2255_s19   ;;  %s1323_s18 = sphi %s1373_s18, %s2254_s18  }
   0x5   : > { %s1398_s24 = sadd.s32 1, %s1335_s21   ;;  %s136_s25 = sadd.s32 1, %s1331_s20 }
   0x6   : > { %s133_s26 = ssub.s32 %s1335_s21, %s1398_s24  ;;  %p146_p0 = scmp.ne.s32.totalorder %s1331_s20, %s1327_s19 }
   0x7   : > { %p134_p1 = scmp.eq.s32.totalorder %s133_s26, 0  ;;  %p147_p2 = scmp.eq.s32.totalorder %s1394_s22, 1 }
   0x8   : > { %p152_p3 = scmp.ne.s32.totalorder %s1327_s19, %s1323_s18  ;;  %p153_p4 = scmp.eq.s32.totalorder %s1107_s23, 1 }
   0x9   : > { %s1409_s27 = scalar_select %p134_p1, %s1331_s20, %s136_s25  }
   0xa   : > { %p1411_p5 = por %p147_p2, %p146_p0  ;;  %p1415_p6 = por %p153_p4, %p152_p3 }
   0xb   : > { %p1108_p7 = scmp.ge.s32.totalorder %s1335_s21, 1  ;;  %p160_p8 = scmp.lt.s32.totalorder %s1335_s21, 3 }
   0xc   : > { %s2152_s28 = scalar_select %p1411_p5, 1, 0 }
   0xd   : > { %s2153_s29 = scalar_select %p1415_p6, 1, 0 }
   0xe   : > { %p2103_p9 = scmp.eq.s32.totalorder %s1394_s22, 0  ;;  %p1422_p10 = pnand %p1108_p7, %p160_p8 }
   0xf   : > { %s1337_s6 = smov [#allocation2]   ;;  %s1241_s11 = scalar_lea.hbm %s2098_s1, 7680 }
  0x10   : > { %s2154_s30 = scalar_select %p1422_p10, 1, 0 }
  0x11   : > { %s172_s7 = sshll.u32 %s1337_s6, 4  ;;  %p1151_p11 = pneg %p1422_p10  ;;  %s173_s7 = int_to_ptr.vmem [resolvable:$true] %s172_s7 }
  0x12   : > { %p1242_p13 = scmp.ne.s32.totalorder %s2098_s1, %s1241_s11  ;;  %p1248_p3 = scmp.lt.u32.totalorder %s1241_s11, %s2098_s1 }
  0x13   : > { %p1430_p12 = pnand %p2103_p9, %p1151_p11 }
  0x15   : > { %p1243_p0 = pneg %p1430_p12 }
  0x17   : > { %p1244_p1 = pnand %p1243_p0, %p1242_p13 }
  0x19   : > { %p1245_p2 = pneg %p1244_p1 }
  0x1b   : > { %p1250_p4 = pnand %p1248_p3, %p1245_p2 }
  0x1d   : > { %1253 = shalt.err (!%p1250_p4)
}
  0x1e   : > { %s1254_s16 = scalar_lea.vmem %s173_s7, 7680  ;;  %p1262_p9 = scmp.lt.s32.totalorder %s173_s7, %s173_s7 }
  0x1f   : > { %p1255_p7 = scmp.ne.s32.totalorder %s173_s7, %s1254_s16  ;;  %p1263_p6 = scmp.lt.s32.totalorder %s1254_s16, %s1254_s16 }
  0x21   : > { %p1257_p8 = pnand %p1255_p7, %p1243_p0  ;;  %p1264_p5 = por %p1263_p6, %p1262_p9 }
  0x23   : > { %p1258_p11 = pneg %p1257_p8 }
  0x25   : > { %p1265_p10 = pnand %p1264_p5, %p1258_p11 }
  0x27   : > { %1268 = shalt.err (!%p1265_p10)
}
  0x28   : > { %s1338_s17 = smov 256   ;;  %s1339_s23 = smov 16  }
  0x29   : > { %1154 = dma.hbm_to_vmem [thread:$0]  (!%p1430_p12), %s2098_s1, 7680, %s173_s7, [#allocation3], %s1338_s17, %s1338_s17, %s1339_s23  }
  0x2a   : > { %p2156_p13 = scmp.ne.s32.totalorder %s2154_s30, 0 }
  0x2c   : > { %206 = sbr.rel (%p2156_p13) target bundleno = 211 (0xd3), region = 40 }
  0x33   : > { %p2157_p1 = scmp.eq.s32.totalorder %s1394_s22, 0 }
  0x35   : > { %1314 = dma.done.wait (%p2157_p1), [#allocation3], 7680   ;;  %p2158_p0 = pmov %p2157_p1 }
  0x36   : > { %s1114_s6 = sshll.u32 %s1394_s22, 2  ;;  %v1340_v0 = vmov 0   ;;  %v2106_v1 = vlaneseq  ;;  %v923_v2 = vld [vmem:[%s2101_s4] sm:$0x1]  ;;  %v973_v5 = vld [vmem:[%s2101_s4 + $0x1] sm:$0x1] }
  0x37   : > { %1316 = vsyncadd (%p2158_p0), [#allocation3], 4294959616  ;;  %1200 = vset.pattern.permute.xlu1 %v1340_v0  ;;  %1199 = vset.pattern.permute.xlu0 %v1340_v0  ;;  %p235_p5 = scmp.lt.s32.totalorder %s1114_s6, 7  ;;  %v539_v3 = vld [vmem:[%s2101_s4] sm:$0x1]  ;;  %v1495_v14 = vld [vmem:[#allocation2 + $0x8] sm:$0xff] }
  0x38   : > { %v1464_v4 = vshrl.u32 %v2106_v1, 7  ;;  %926 = vperm.xlu1 %1200, %v923_v2   ;;  %542 = vperm.xlu0 %1199, %v539_v3   ;;  %v590_v6 = vld [vmem:[%s2101_s4 + $0x1] sm:$0x1]  ;;  %v1497_v15 = vld [vmem:[#allocation2 + $0x10] sm:$0xff]  ;;  %v1499_v16 = vld [vmem:[#allocation2 + $0x18] sm:$0xff]  ;;  %vm519_vm0 = vcmask 1043456  }
  0x39   : > { %s2259_s6 = smov (!%p235_p5, %s1114_s6), 7  ;;  %v1486_v10 = vld [vmem:[#allocation2] sm:$0xff]  ;;  %v1515_v20 = vld [vmem:[%s2099_s2 + $0x8] sm:$0xff]  ;;  %v1520_v21 = vld [vmem:[%s2099_s2 + $0x10] sm:$0xff]  ;;  %s1144_s30 = sshll.u32 %s1394_s22, 7 }
  0x3a   : > { %s1115_s8 = sshll.u32 %s2259_s6, 3  ;;  %2159 = vst [vmem:[#allocation8_spill] sm:$0xff] %v1464_v4  ;;  %v1478_v7 = vsub.s32 0, %v1464_v4  ;;  %v1493_v13 = vsub.s32 1, %v1464_v4  ;;  %v1502_v17 = vsub.s32 2, %v1464_v4  ;;  %v1505_v18 = vsub.s32 3, %v1464_v4  ;;  %s2049_s13 = scalar_lea.hbm %s2102_s5, %s1144_s30 }
  0x3b   : > { %s1475_s17 = scalar_lea.vmem %s2097_s0, %s1115_s8  ;;  %v1510_v19 = vld [vmem:[%s2099_s2] sm:$0xff]  ;;  %v1525_v22 = vld [vmem:[%s2099_s2 + $0x18] sm:$0xff]  ;;  %v1529_v24 = vld [vmem:[#allocation2 + $0x28] sm:$0xff]  ;;  %v1540_v33 = vsub.s32 4, %v1464_v4  ;;  %v1543_v34 = vsub.s32 5, %v1464_v4  ;;  %p2252_p9 = scmp.ne.s32.totalorder %s2152_s28, 0 }
  0x3c   : > { %976 = vperm.xlu1 %1200, %v973_v5   ;;  %593 = vperm.xlu0 %1199, %v590_v6   ;;  %v1481_v8 = vld [vmem:[%s1475_s17 + $0x10] sm:$0x3f]  ;;  %v1484_v9 = vld [vmem:[%s1475_s17 + $0x18] sm:$0x3f]  ;;  %2160 = vst [vmem:[#allocation9_spill] sm:$0xff] %v1505_v18  ;;  %v1527_v23 = vld [vmem:[#allocation2 + $0x20] sm:$0xff] }
  0x3d   : > { %v656_v11 = vrot.slane %v1481_v8, %v1478_v7  ;;  %v660_v12 = vrot.slane %v1484_v9, %v1478_v7  ;;  %v1531_v25 = vld [vmem:[#allocation2 + $0x30] sm:$0xff]  ;;  %v1533_v26 = vld [vmem:[#allocation2 + $0x38] sm:$0xff]  ;;  %v651_v27 = vld [vmem:[#allocation2 + $0x40] sm:$0xf]  ;;  %v694_v38 = vrot.slane %v1481_v8, %v1493_v13  ;;  %v698_v39 = vrot.slane %v1484_v9, %v1493_v13  ;;  %s1342_s15 = smov [#allocation5]  }
  0x3e   : > { %v652_v28 = vld [vmem:[#allocation2 + $0x48] sm:$0xf]  ;;  %v1548_v35 = vld [vmem:[%s2099_s2 + $0x20] sm:$0xff]  ;;  %v1555_v37 = vld [vmem:[#allocation2 + $0x50] sm:$0xff]  ;;  %v1576_v46 = vrot.slane %v1481_v8, %v1502_v17  ;;  %v1580_v47 = vrot.slane %v1484_v9, %v1502_v17  ;;  %s1273_s16 = sshll.u32 %s1342_s15, 4  ;;  %s1274_s16 = int_to_ptr.vmem [resolvable:$false] %s1273_s16 }
  0x3f   : > { %v661_v29 = vmul.f32 %v656_v11, %v1486_v10  ;;  %v662_v30 = vmul.f32 %v660_v12, %v1495_v14  ;;  %v663_v31 = vmul.f32 %v656_v11, %v1497_v15  ;;  %v664_v32 = vmul.f32 %v660_v12, %v1499_v16  ;;  %v1553_v36 = vld [vmem:[%s2099_s2 + $0x28] sm:$0xff]  ;;  %2161 = vst [vmem:[#allocation10_spill] sm:$0xff] %v1555_v37  ;;  %v1564_v40 = vld [vmem:[%s2099_s2 + $0x30] sm:$0xff]  ;;  %v1568_v43 = vld [vmem:[#allocation2 + $0x58] sm:$0xff]  ;;  %s1275_s23 = scalar_lea.vmem %s1274_s16, 256 }
  0x40   : > { %2162 = vst [vmem:[#allocation11_spill] sm:$0xff] %v1564_v40  ;;  %v665_v41 = vmul.f32 %v656_v11, %v1527_v23  ;;  %v666_v42 = vmul.f32 %v660_v12, %v1529_v24  ;;  %2163 = vst [vmem:[#allocation12_spill] sm:$0xff] %v1568_v43  ;;  %v1570_v44 = vld [vmem:[#allocation2 + $0x60] sm:$0xff]  ;;  %v1572_v45 = vld [vmem:[#allocation2 + $0x68] sm:$0xff]  ;;  %v667_v49 = vmul.f32 %v656_v11, %v1531_v25 }
  0x41   : > { %2164 = vst [vmem:[#allocation13_spill] sm:$0xff] %v1570_v44  ;;  %2165 = vst [vmem:[#allocation14_spill] sm:$0xff] %v1572_v45  ;;  %v1585_v48 = vld [vmem:[%s2099_s2 + $0x38] sm:$0xff]  ;;  %v668_v50 = vmul.f32 %v660_v12, %v1533_v26  ;;  %v669_v51 = vmul.f32 %v656_v11, %v651_v27  ;;  %v670_v52 = vmul.f32 %v660_v12, %v652_v28  ;;  %v1589_v53 = vld [vmem:[#allocation2 + $0x70] sm:$0xff] }
  0x42   : > { %2166 = vst [vmem:[#allocation15_spill] sm:$0xff] %v1585_v48  ;;  %2167 = vst [vmem:[#allocation16_spill] sm:$0xff] %v1589_v53  ;;  %v1591_v54 = vld [vmem:[#allocation2 + $0x78] sm:$0xff]  ;;  %v1596_v55 = vld [vmem:[%s2099_s2 + $0x40] sm:$0xf]  ;;  %v671_v57 = vadd.f32 %v661_v29, %v1510_v19  ;;  %v672_v58 = vadd.f32 %v662_v30, %v1515_v20  ;;  %v673_v59 = vadd.f32 %v663_v31, %v1520_v21 }
  0x43   : > { %2168 = vst [vmem:[#allocation17_spill] sm:$0xff] %v1591_v54  ;;  %2169 = vst [vmem:[#allocation18_spill] sm:$0xff] %v1596_v55  ;;  %v1601_v56 = vld [vmem:[%s2099_s2 + $0x48] sm:$0xf]  ;;  %v674_v60 = vadd.f32 %v664_v32, %v1525_v22  ;;  %v1607_v61 = vld [vmem:[#allocation2 + $0x80] sm:$0xff]  ;;  %v699_v2 = vmul.f32 %v694_v38, %v1555_v37  ;;  %v700_v3 = vmul.f32 %v698_v39, %v1568_v43 }
  0x44   : > { %2170 = vst [vmem:[#allocation19_spill] sm:$0xff] %v1601_v56  ;;  %v1609_v62 = vld [vmem:[#allocation2 + $0x88] sm:$0xff]  ;;  %v689_v63 = vld [vmem:[#allocation2 + $0x90] sm:$0xf]  ;;  %v690_v0 = vld [vmem:[#allocation2 + $0x98] sm:$0xf]  ;;  %v701_v5 = vmul.f32 %v694_v38, %v1570_v44  ;;  %v702_v6 = vmul.f32 %v698_v39, %v1572_v45  ;;  %v675_v11 = vadd.f32 %v665_v41, %v1548_v35  ;;  %v676_v12 = vadd.f32 %v666_v42, %v1553_v36 }
  0x45   : > { %v703_v27 = vmul.f32 %v694_v38, %v1589_v53  ;;  %v704_v28 = vmul.f32 %v698_v39, %v1591_v54  ;;  %v677_v29 = vadd.f32 %v667_v49, %v1564_v40  ;;  %v678_v30 = vadd.f32 %v668_v50, %v1585_v48  ;;  %v1623_v1 = vld [vmem:[#allocation2 + $0xa0] sm:$0xff]  ;;  %v1625_v4 = vld [vmem:[#allocation2 + $0xa8] sm:$0xff]  ;;  %v1627_v45 = vld [vmem:[#allocation2 + $0xb0] sm:$0xff] }
  0x46   : > { %v679_v31 = vadd.f32 %v669_v51, %v1596_v55  ;;  %v680_v32 = vadd.f32 %v670_v52, %v1601_v56  ;;  %2171 = vst [vmem:[#allocation20_spill] sm:$0xff] %v1625_v4  ;;  %2172 = vst [vmem:[#allocation21_spill] sm:$0xff] %v1627_v45  ;;  %v705_v41 = vmul.f32 %v694_v38, %v1607_v61  ;;  %v1631_v44 = vld [vmem:[#allocation2 + $0xb8] sm:$0xff]  ;;  %v1633_v49 = vld [vmem:[#allocation2 + $0xc0] sm:$0xff] }
  0x47   : > { %v706_v42 = vmul.f32 %v698_v39, %v1609_v62  ;;  %v707_v53 = vmul.f32 %v694_v38, %v689_v63  ;;  %v708_v54 = vmul.f32 %v698_v39, %v690_v0  ;;  %2173 = vst [vmem:[#allocation22_spill] sm:$0xff] %v1631_v44  ;;  %2174 = vst [vmem:[#allocation23_spill] sm:$0xff] %v1633_v49  ;;  %v1635_v50 = vld [vmem:[#allocation2 + $0xc8] sm:$0xff]  ;;  %v1637_v43 = vld [vmem:[#allocation2 + $0xd0] sm:$0xff] }
  0x48   : > { %2175 = vst [vmem:[#allocation24_spill] sm:$0xff] %v1635_v50  ;;  %v709_v51 = vadd.f32 %v699_v2, %v671_v57  ;;  %v710_v52 = vadd.f32 %v700_v3, %v672_v58  ;;  %v711_v56 = vadd.f32 %v701_v5, %v673_v59  ;;  %v712_v55 = vadd.f32 %v702_v6, %v674_v60  ;;  %v1639_v40 = vld [vmem:[#allocation2 + $0xd8] sm:$0xff]  ;;  %v727_v63 = vld [vmem:[#allocation2 + $0xe0] sm:$0xf]  ;;  %v728_v0 = vld [vmem:[#allocation2 + $0xe8] sm:$0xf] }
  0x49   : > { %2176 = vst [vmem:[#allocation25_spill] sm:$0xff] %v1637_v43  ;;  %v713_v37 = vadd.f32 %v703_v27, %v675_v11  ;;  %v714_v48 = vadd.f32 %v704_v28, %v676_v12  ;;  %2177 = vst [vmem:[#allocation26_spill] sm:$0xff] %v1639_v40  ;;  %v737_v38 = vmul.f32 %v1576_v46, %v1623_v1 }
  0x4a   : > { %v738_v39 = vmul.f32 %v1580_v47, %v1625_v4  ;;  %v739_v57 = vmul.f32 %v1576_v46, %v1627_v45  ;;  %v740_v58 = vmul.f32 %v1580_v47, %v1631_v44  ;;  %v741_v59 = vmul.f32 %v1576_v46, %v1633_v49  ;;  %v1661_v49 = vld [vmem:[#allocation2 + $0xf0] sm:$0xff]  ;;  %v1663_v44 = vld [vmem:[#allocation2 + $0xf8] sm:$0xff]  ;;  %v1667_v45 = vld [vmem:[#allocation2 + $0x100] sm:$0xff] }
  0x4b   : > { %v742_v60 = vmul.f32 %v1580_v47, %v1635_v50  ;;  %v715_v2 = vadd.f32 %v705_v41, %v677_v29  ;;  %v743_v3 = vmul.f32 %v1576_v46, %v1637_v43  ;;  %v770_v5 = vrot.slane %v1481_v8, %v1505_v18  ;;  %2178 = vst [vmem:[#allocation27_spill] sm:$0xff] %v1661_v49  ;;  %v1669_v4 = vld [vmem:[#allocation2 + $0x108] sm:$0xff] }
  0x4c   : > { %v774_v6 = vrot.slane %v1484_v9, %v1505_v18  ;;  %v716_v11 = vadd.f32 %v706_v42, %v678_v30  ;;  %v717_v12 = vadd.f32 %v707_v53, %v679_v31  ;;  %v718_v27 = vadd.f32 %v708_v54, %v680_v32  ;;  %2179 = vst [vmem:[#allocation28_spill] sm:$0xff] %v1663_v44  ;;  %v1671_v32 = vld [vmem:[#allocation2 + $0x110] sm:$0xff]  ;;  %v1673_v42 = vld [vmem:[#allocation2 + $0x118] sm:$0xff]  ;;  %v1675_v18 = vld [vmem:[#allocation2 + $0x120] sm:$0xff] }
  0x4d   : > { %v744_v28 = vmul.f32 %v1580_v47, %v1639_v40  ;;  %v745_v29 = vmul.f32 %v1576_v46, %v727_v63  ;;  %v746_v41 = vmul.f32 %v1580_v47, %v728_v0  ;;  %v747_v43 = vadd.f32 %v737_v38, %v709_v51  ;;  %2180 = vst [vmem:[#allocation29_spill] sm:$0xff] %v1667_v45  ;;  %v1677_v46 = vld [vmem:[#allocation2 + $0x128] sm:$0xff]  ;;  %v765_v47 = vld [vmem:[#allocation2 + $0x130] sm:$0xf]  ;;  %v766_v51 = vld [vmem:[#allocation2 + $0x138] sm:$0xf] }
  0x4e   : > { %v748_v50 = vadd.f32 %v738_v39, %v710_v52  ;;  %2181 = vst [vmem:[#allocation30_spill] sm:$0xff] %v1669_v4  ;;  %v749_v30 = vadd.f32 %v739_v57, %v711_v56  ;;  %v750_v53 = vadd.f32 %v740_v58, %v712_v55  ;;  %v751_v54 = vadd.f32 %v741_v59, %v713_v37  ;;  %v1685_v39 = vld [vmem:[#allocation2 + $0x140] sm:$0xff] }
  0x4f   : > { %v752_v31 = vadd.f32 %v742_v60, %v714_v48  ;;  %2182 = vst [vmem:[#allocation31_spill] sm:$0xff] %v1671_v32  ;;  %2183 = vst [vmem:[#allocation32_spill] sm:$0xff] %v1673_v42  ;;  %v753_v40 = vadd.f32 %v743_v3, %v715_v2  ;;  %v775_v52 = vmul.f32 %v770_v5, %v1661_v49  ;;  %v1692_v60 = vld [vmem:[#allocation2 + $0x148] sm:$0xff]  ;;  %v1697_v49 = vld [vmem:[#allocation2 + $0x158] sm:$0xff] }
  0x50   : > { %2184 = vst [vmem:[#allocation33_spill] sm:$0xff] %v1675_v18  ;;  %2185 = vst [vmem:[#allocation34_spill] sm:$0xff] %v1677_v46  ;;  %v776_v38 = vmul.f32 %v774_v6, %v1663_v44  ;;  %v808_v55 = vrot.slane %v1481_v8, %v1540_v33  ;;  %v754_v37 = vadd.f32 %v744_v28, %v716_v11 }
  0x51   : > { %v777_v48 = vmul.f32 %v770_v5, %v1667_v45  ;;  %v778_v56 = vmul.f32 %v774_v6, %v1669_v4  ;;  %2186 = vst [vmem:[#allocation35_spill] sm:$0xff] %v1685_v39  ;;  %v812_v63 = vrot.slane %v1484_v9, %v1540_v33  ;;  %v755_v0 = vadd.f32 %v745_v29, %v717_v12  ;;  %v1695_v4 = vld [vmem:[#allocation2 + $0x150] sm:$0xff]  ;;  %v1699_v12 = vld [vmem:[#allocation2 + $0x160] sm:$0xff] }
  0x52   : > { %v779_v57 = vmul.f32 %v770_v5, %v1671_v32  ;;  %v780_v58 = vmul.f32 %v774_v6, %v1673_v42  ;;  %v781_v59 = vmul.f32 %v770_v5, %v1675_v18  ;;  %2187 = vst [vmem:[#allocation36_spill] sm:$0xff] %v1692_v60  ;;  %v756_v2 = vadd.f32 %v746_v41, %v718_v27  ;;  %v1704_v27 = vld [vmem:[#allocation2 + $0x168] sm:$0xff]  ;;  %v1706_v41 = vld [vmem:[#allocation2 + $0x170] sm:$0xff] }
  0x53   : > { %v782_v3 = vmul.f32 %v774_v6, %v1677_v46  ;;  %v783_v11 = vmul.f32 %v770_v5, %v765_v47  ;;  %v784_v28 = vmul.f32 %v774_v6, %v766_v51  ;;  %v785_v45 = vadd.f32 %v775_v52, %v747_v43  ;;  %2188 = vst [vmem:[#allocation37_spill] sm:$0xff] %v1697_v49  ;;  %v1709_v6 = vld [vmem:[#allocation2 + $0x190] sm:$0xff]  ;;  %v1713_v52 = vld [vmem:[#allocation2 + $0x178] sm:$0xff]  ;;  %v1720_v46 = vld [vmem:[#allocation2 + $0x1a0] sm:$0xff] }
  0x54   : > { %v786_v44 = vadd.f32 %v776_v38, %v748_v50  ;;  %2189 = vst [vmem:[#allocation38_spill] sm:$0xff] %v1699_v12  ;;  %v813_v29 = vmul.f32 %v808_v55, %v1685_v39  ;;  %v846_v18 = vrot.slane %v1481_v8, %v1543_v34  ;;  %v787_v42 = vadd.f32 %v777_v48, %v749_v30  ;;  %v803_v38 = vld [vmem:[#allocation2 + $0x180] sm:$0xf]  ;;  %v1716_v30 = vld [vmem:[#allocation2 + $0x198] sm:$0xff] }
  0x55   : > { %v788_v32 = vadd.f32 %v778_v56, %v750_v53  ;;  %2190 = vst [vmem:[#allocation39_spill] sm:$0xff] %v1704_v27  ;;  %2191 = vst [vmem:[#allocation40_spill] sm:$0xff] %v1706_v41  ;;  %v814_v5 = vmul.f32 %v812_v63, %v1692_v60  ;;  %v850_v43 = vrot.slane %v1484_v9, %v1543_v34  ;;  %v804_v56 = vld [vmem:[#allocation2 + $0x188] sm:$0xf] }
  0x56   : > { %2192 = vst [vmem:[#allocation41_spill] sm:$0xff] %v1709_v6  ;;  %v789_v50 = vadd.f32 %v779_v57, %v751_v54  ;;  %v790_v47 = vadd.f32 %v780_v58, %v752_v31  ;;  %v791_v51 = vadd.f32 %v781_v59, %v753_v40  ;;  %2193 = vst [vmem:[#allocation42_spill] sm:$0xff] %v1713_v52  ;;  %v1724_v31 = vld [vmem:[#allocation2 + $0x1a8] sm:$0xff] }
  0x57   : > { %v815_v8 = vmul.f32 %v808_v55, %v1695_v4  ;;  %v792_v53 = vadd.f32 %v782_v3, %v754_v37  ;;  %v793_v48 = vadd.f32 %v783_v11, %v755_v0  ;;  %v816_v60 = vmul.f32 %v812_v63, %v1697_v49  ;;  %2194 = vst [vmem:[#allocation43_spill] sm:$0xff] %v1724_v31 }
  0x58   : > { %v817_v39 = vmul.f32 %v808_v55, %v1699_v12  ;;  %v818_v9 = vmul.f32 %v812_v63, %v1704_v27  ;;  %v819_v40 = vmul.f32 %v808_v55, %v1706_v41  ;;  %v823_v54 = vadd.f32 %v813_v29, %v785_v45  ;;  %v1730_v41 = vld [vmem:[#allocation2 + $0x1b0] sm:$0xff]  ;;  %v1732_v45 = vld [vmem:[#allocation2 + $0x1b8] sm:$0xff] }
  0x59   : > { %v851_v57 = vmul.f32 %v846_v18, %v1709_v6  ;;  %v820_v58 = vmul.f32 %v812_v63, %v1713_v52  ;;  %v821_v37 = vmul.f32 %v808_v55, %v803_v38  ;;  %v824_v0 = vadd.f32 %v814_v5, %v786_v44  ;;  %v1735_v55 = vld [vmem:[#allocation2 + $0x1c0] sm:$0xff]  ;;  %v1737_v44 = vld [vmem:[#allocation2 + $0x1c8] sm:$0xff]  ;;  %v842_v38 = vld [vmem:[#allocation2 + $0x1d8] sm:$0xf] }
  0x5a   : > { %v852_v59 = vmul.f32 %v850_v43, %v1716_v30  ;;  %v794_v3 = vadd.f32 %v784_v28, %v756_v2  ;;  %v822_v11 = vmul.f32 %v812_v63, %v804_v56  ;;  %v825_v12 = vadd.f32 %v815_v8, %v787_v42  ;;  %v841_v2 = vld [vmem:[#allocation2 + $0x1d0] sm:$0xf]  ;;  %v1743_v8 = vld [vmem:[%s1475_s17 + $0x8] sm:$0x3f] }
  0x5b   : > { %v853_v49 = vmul.f32 %v846_v18, %v1720_v46  ;;  %v826_v27 = vadd.f32 %v816_v60, %v788_v32  ;;  %v854_v29 = vmul.f32 %v850_v43, %v1724_v31  ;;  %v827_v6 = vadd.f32 %v817_v39, %v789_v50  ;;  %v1740_v60 = vld [vmem:[%s1475_s17] sm:$0x3f]  ;;  %s231_s17 = sand.u32 1, %s1327_s19  }
  0x5c   : > { %v828_v52 = vadd.f32 %v818_v9, %v790_v47  ;;  %v861_v63 = vadd.f32 %v851_v57, %v823_v54  ;;  %v829_v42 = vadd.f32 %v819_v40, %v791_v51  ;;  %v830_v28 = vadd.f32 %v820_v58, %v792_v53  ;;  %s1113_s9 = sshll.u32 %s231_s17, 3  ;;  %s1022_s22 = scalar_lea.sflag [#allocation4], %s231_s17 }
  0x5d   : > { %v831_v5 = vadd.f32 %v821_v37, %v793_v48  ;;  %v862_v32 = vadd.f32 %v852_v59, %v824_v0  ;;  %v832_v56 = vadd.f32 %v822_v11, %v794_v3  ;;  %v855_v31 = vmul.f32 %v846_v18, %v1730_v41  ;;  %v261_v59 = vld [vmem:[#allocation2 + $0x40] sm:$0xf]  ;;  %v262_v3 = vld [vmem:[#allocation2 + $0x48] sm:$0xf]  ;;  %s233_s7 = scalar_lea.vmem [#allocation5], %s1113_s9 }
  0x5e   : > { %v856_v39 = vmul.f32 %v850_v43, %v1732_v45  ;;  %v863_v50 = vadd.f32 %v853_v49, %v825_v12  ;;  %v857_v47 = vmul.f32 %v846_v18, %v1735_v55  ;;  %v858_v9 = vmul.f32 %v850_v43, %v1737_v44  ;;  %s1036_s10 = sshll.u32 %s233_s7, 4  ;;  %s2051_s10 = int_to_ptr.vmem [resolvable:$true] %s1036_s10 }
  0x5f   : > { %v859_v54 = vmul.f32 %v846_v18, %v841_v2  ;;  %v864_v51 = vadd.f32 %v854_v29, %v826_v27  ;;  %v860_v53 = vmul.f32 %v850_v43, %v842_v38  ;;  %1201 = vtanh.f32 %v861_v63  ;;  %s1269_s14 = scalar_lea.vmem %s2051_s10, 128  ;;  %p1276_p2 = scmp.lt.s32.totalorder %s2051_s10, %s1274_s16 }
  0x60   : > { %v266_v48 = vrot.slane %v1740_v60, %v1478_v7  ;;  %v270_v40 = vrot.slane %v1743_v8, %v1478_v7  ;;  %1203 = vtanh.f32 %v862_v32  ;;  %v865_v57 = vadd.f32 %v855_v31, %v827_v6  ;;  %v300_v32 = vld [vmem:[#allocation2 + $0x90] sm:$0xf]  ;;  %p1270_p6 = scmp.ne.s32.totalorder %s2051_s10, %s1269_s14  ;;  %p1277_p3 = scmp.lt.s32.totalorder %s1275_s23, %s1269_s14 }
  0x61   : > { %v866_v58 = vadd.f32 %v856_v39, %v828_v52  ;;  %1205 = vtanh.f32 %v863_v50  ;;  %v867_v37 = vadd.f32 %v857_v47, %v829_v42  ;;  %v868_v49 = vadd.f32 %v858_v9, %v830_v28  ;;  %v2195_v28 = vld [vmem:[#allocation11_spill] sm:$0xff]  ;;  %v2201_v50 = vld [vmem:[#allocation13_spill] sm:$0xff]  ;;  %v2202_v9 = vld [vmem:[#allocation14_spill] sm:$0xff] }
  0x62   : > { %v869_v12 = vadd.f32 %v859_v54, %v831_v5  ;;  %1207 = vtanh.f32 %v864_v51  ;;  %v870_v0 = vadd.f32 %v860_v53, %v832_v56  ;;  %v271_v18 = vmul.f32 %v1486_v10, %v266_v48  ;;  %v2196_v5 = vld [vmem:[#allocation15_spill] sm:$0xff]  ;;  %v2197_v56 = vld [vmem:[#allocation10_spill] sm:$0xff]  ;;  %v1804_v53 = vld [vmem:[%s2100_s3 + $0x10] sm:$0xff]  ;;  %p1271_p10 = pnand %p1270_p6, %p2252_p9  ;;  %p1278_p4 = por %p1277_p3, %p1276_p2 }
  0x63   : > { %v272_v27 = vmul.f32 %v1495_v14, %v270_v40  ;;  %v305_v43 = vrot.slane %v1740_v60, %v1493_v13  ;;  %v273_v7 = vmul.f32 %v1497_v15, %v266_v48  ;;  %v274_v6 = vmul.f32 %v1499_v16, %v270_v40  ;;  %2203 = vst [vmem:[#allocation10_spill] sm:$0xff] %v1804_v53 }
  0x64   : > { %v275_v52 = vmul.f32 %v1527_v23, %v266_v48  ;;  %v309_v31 = vrot.slane %v1743_v8, %v1493_v13  ;;  %1209 = vtanh.f32 %v865_v57  ;;  %v276_v11 = vmul.f32 %v1529_v24, %v270_v40  ;;  %v2205_v57 = vld [vmem:[#allocation16_spill] sm:$0xff]  ;;  %p1272_p12 = pneg %p1271_p10 }
  0x65   : > { %v277_v10 = vmul.f32 %v1531_v25, %v266_v48  ;;  %v278_v14 = vmul.f32 %v1533_v26, %v270_v40  ;;  %1211 = vtanh.f32 %v866_v58  ;;  %v279_v29 = vmul.f32 %v266_v48, %v261_v59  ;;  %v2204_v48 = vld [vmem:[#allocation18_spill] sm:$0xff] }
  0x66   : > { %v1767_v2 = vrot.slane %v1740_v60, %v1502_v17  ;;  %v1771_v15 = vrot.slane %v1743_v8, %v1502_v17  ;;  %1213 = vtanh.f32 %v867_v37  ;;  %v280_v16 = vmul.f32 %v270_v40, %v262_v3  ;;  %v2206_v37 = vld [vmem:[#allocation17_spill] sm:$0xff]  ;;  %p1279_p7 = pnand %p1278_p4, %p1272_p12 }
  0x67   : > { %v281_v13 = vadd.f32 %v271_v18, %v1510_v19  ;;  %v282_v23 = vadd.f32 %v272_v27, %v1515_v20  ;;  %1215 = vtanh.f32 %v868_v49  ;;  %v283_v24 = vadd.f32 %v273_v7, %v1520_v21  ;;  %v1789_v20 = vld [vmem:[%s2100_s3] sm:$0xff]  ;;  %v1794_v21 = vld [vmem:[%s2100_s3 + $0x8] sm:$0xff]  ;;  %v1815_v18 = vld [vmem:[%s2100_s3 + $0x18] sm:$0xff] }
  0x68   : > { %v284_v25 = vadd.f32 %v274_v6, %v1525_v22  ;;  %v285_v26 = vadd.f32 %v275_v52, %v1548_v35  ;;  %v286_v42 = vadd.f32 %v276_v11, %v1553_v36  ;;  %v287_v17 = vadd.f32 %v277_v10, %v2195_v28  ;;  %2198 = vst [vmem:[#allocation11_spill] sm:$0xff] %v1789_v20  ;;  %v301_v22 = vld [vmem:[#allocation2 + $0x98] sm:$0xf]  ;;  %v2200_v35 = vld [vmem:[#allocation12_spill] sm:$0xff]  ;;  %v2208_v27 = vld [vmem:[#allocation19_spill] sm:$0xff] }
  0x69   : > { %v1778_v63 = vpop.eup %1201  ;;  %v288_v38 = vadd.f32 %v278_v14, %v2196_v5  ;;  %v310_v19 = vmul.f32 %v2197_v56, %v305_v43  ;;  %1217 = vtanh.f32 %v869_v12  ;;  %2199 = vst [vmem:[#allocation15_spill] sm:$0xff] %v1794_v21  ;;  %v311_v36 = vmul.f32 %v2200_v35, %v309_v31  ;;  %2207 = vst [vmem:[#allocation12_spill] sm:$0xff] %v1815_v18 }
  0x6a   : > { %v1784_v39 = vpop.eup %1203  ;;  %v312_v47 = vmul.f32 %v2201_v50, %v305_v43  ;;  %v313_v54 = vmul.f32 %v2202_v9, %v309_v31  ;;  %v289_v40 = vadd.f32 %v279_v29, %v2204_v48  ;;  %v314_v58 = vmul.f32 %v2205_v57, %v305_v43  ;;  %v2217_v9 = vld [vmem:[#allocation24_spill] sm:$0xff] }
  0x6b   : > { %v1799_v51 = vpop.eup %1205  ;;  %v315_v49 = vmul.f32 %v2206_v37, %v309_v31  ;;  %v316_v12 = vmul.f32 %v1607_v61, %v305_v43  ;;  %1219 = vtanh.f32 %v870_v0  ;;  %v290_v3 = vadd.f32 %v280_v16, %v2208_v27 }
  0x6c   : > { %v1810_v59 = vpop.eup %1207  ;;  %v317_v7 = vmul.f32 %v1609_v62, %v309_v31  ;;  %v318_v6 = vmul.f32 %v305_v43, %v300_v32  ;;  %v891_v52 = vmul.f32 %v1778_v63, %v1789_v20  ;;  %v1823_v11 = vmul.f32 %v1784_v39, %v1794_v21 }
  0x6d   : > { %v319_v61 = vmul.f32 %v309_v31, %v301_v22  ;;  %v320_v10 = vadd.f32 %v310_v19, %v281_v13  ;;  %v893_v0 = vmul.f32 %v1799_v51, %v1804_v53  ;;  %v321_v14 = vadd.f32 %v311_v36, %v282_v23  ;;  %v1838_v31 = vld [vmem:[%s2100_s3 + $0x20] sm:$0xff]  ;;  %v2212_v19 = vld [vmem:[#allocation20_spill] sm:$0xff] }
  0x6e   : > { %v322_v29 = vadd.f32 %v312_v47, %v283_v24  ;;  %v323_v28 = vadd.f32 %v313_v54, %v284_v25  ;;  %v1827_v5 = vpop.eup %1209  ;;  %v1831_v62 = vmul.f32 %v1810_v59, %v1815_v18  ;;  %v324_v43 = vadd.f32 %v314_v58, %v285_v26  ;;  %2211 = vst [vmem:[#allocation18_spill] sm:$0xff] %v1838_v31  ;;  %v339_v24 = vld [vmem:[#allocation2 + $0xe0] sm:$0xf]  ;;  %v1849_v26 = vld [vmem:[%s2100_s3 + $0x28] sm:$0xff] }
  0x6f   : > { %2209 = vst [vmem:[#allocation13_spill] sm:$0xff] %v1827_v5  ;;  %v325_v16 = vadd.f32 %v315_v49, %v286_v42  ;;  %v326_v32 = vadd.f32 %v316_v12, %v287_v17  ;;  %v1833_v56 = vpop.eup %1211  ;;  %v327_v13 = vadd.f32 %v317_v7, %v288_v38  ;;  %v328_v23 = vadd.f32 %v318_v6, %v289_v40  ;;  %v340_v42 = vld [vmem:[#allocation2 + $0xe8] sm:$0xf]  ;;  %v2214_v17 = vld [vmem:[#allocation21_spill] sm:$0xff]  ;;  %v2215_v38 = vld [vmem:[#allocation22_spill] sm:$0xff] }
  0x70   : > { %2210 = vst [vmem:[#allocation14_spill] sm:$0xff] %v1833_v56  ;;  %v349_v25 = vmul.f32 %v1623_v1, %v1767_v2  ;;  %v350_v22 = vmul.f32 %v2212_v19, %v1771_v15  ;;  %v1844_v35 = vpop.eup %1213  ;;  %2213 = vst [vmem:[#allocation16_spill] sm:$0xff] %v1849_v26  ;;  %v351_v36 = vmul.f32 %v2214_v17, %v1767_v2  ;;  %v2216_v47 = vld [vmem:[#allocation23_spill] sm:$0xff]  ;;  %v2218_v40 = vld [vmem:[#allocation25_spill] sm:$0xff] }
  0x71   : > { %v352_v50 = vmul.f32 %v2215_v38, %v1771_v15  ;;  %v353_v1 = vmul.f32 %v2216_v47, %v1767_v2  ;;  %v354_v54 = vmul.f32 %v2217_v9, %v1771_v15  ;;  %v1859_v48 = vpop.eup %1215  ;;  %v355_v57 = vmul.f32 %v2218_v40, %v1767_v2  ;;  %v2219_v58 = vld [vmem:[#allocation26_spill] sm:$0xff]  ;;  %v2220_v49 = vld [vmem:[#allocation9_spill] sm:$0xff] }
  0x72   : > { %v356_v37 = vmul.f32 %v2219_v58, %v1771_v15  ;;  %v383_v12 = vrot.slane %v1740_v60, %v2220_v49  ;;  %v387_v27 = vrot.slane %v1743_v8, %v2220_v49  ;;  %v1871_v7 = vmul.f32 %v1827_v5, %v1838_v31 }
  0x73   : > { %v1873_v6 = vadd.f32 %v893_v0, %v891_v52  ;;  %v329_v19 = vadd.f32 %v319_v61, %v290_v3  ;;  %v357_v17 = vmul.f32 %v1767_v2, %v339_v24  ;;  %v1876_v38 = vpop.eup %1217  ;;  %v1880_v47 = vmul.f32 %v1833_v56, %v1849_v26  ;;  %v378_v61 = vld [vmem:[#allocation2 + $0x130] sm:$0xf]  ;;  %v2222_v2 = vld [vmem:[#allocation27_spill] sm:$0xff]  ;;  %v379_v26 = vld [vmem:[#allocation2 + $0x138] sm:$0xf] }
  0x74   : > { %v358_v9 = vmul.f32 %v1771_v15, %v340_v42  ;;  %v359_v40 = vadd.f32 %v349_v25, %v320_v10  ;;  %v360_v58 = vadd.f32 %v350_v22, %v321_v14  ;;  %v361_v49 = vadd.f32 %v351_v36, %v322_v29  ;;  %v2223_v24 = vld [vmem:[#allocation28_spill] sm:$0xff]  ;;  %v2224_v56 = vld [vmem:[#allocation29_spill] sm:$0xff]  ;;  %v2225_v29 = vld [vmem:[#allocation30_spill] sm:$0xff] }
  0x75   : > { %2221 = vst [vmem:[#allocation17_spill] sm:$0xff] %v1880_v47  ;;  %v362_v18 = vadd.f32 %v352_v50, %v323_v28  ;;  %v363_v53 = vadd.f32 %v353_v1, %v324_v43  ;;  %v364_v31 = vadd.f32 %v354_v54, %v325_v16  ;;  %v1883_v21 = vpop.eup %1219  ;;  %v365_v52 = vadd.f32 %v355_v57, %v326_v32  ;;  %v2226_v43 = vld [vmem:[#allocation31_spill] sm:$0xff]  ;;  %v2227_v32 = vld [vmem:[#allocation32_spill] sm:$0xff]  ;;  %v2228_v25 = vld [vmem:[#allocation33_spill] sm:$0xff] }
  0x76   : > { %v366_v3 = vadd.f32 %v356_v37, %v327_v13  ;;  %v388_v0 = vmul.f32 %v2222_v2, %v383_v12  ;;  %v389_v20 = vmul.f32 %v2223_v24, %v387_v27  ;;  %v367_v5 = vadd.f32 %v357_v17, %v328_v23  ;;  %v2229_v42 = vld [vmem:[#allocation34_spill] sm:$0xff]  ;;  %v2230_v37 = vld [vmem:[#allocation35_spill] sm:$0xff]  ;;  %v2231_v17 = vld [vmem:[#allocation36_spill] sm:$0xff] }
  0x77   : > { %v390_v47 = vmul.f32 %v2224_v56, %v383_v12  ;;  %v422_v15 = vrot.slane %v1740_v60, %v1540_v33  ;;  %v426_v10 = vrot.slane %v1743_v8, %v1540_v33  ;;  %v368_v14 = vadd.f32 %v358_v9, %v329_v19 }
  0x78   : > { %v391_v28 = vmul.f32 %v2225_v29, %v387_v27  ;;  %v392_v16 = vmul.f32 %v2226_v43, %v383_v12  ;;  %v393_v13 = vmul.f32 %v2227_v32, %v387_v27  ;;  %v394_v22 = vmul.f32 %v2228_v25, %v383_v12  ;;  %v2236_v25 = vld [vmem:[#allocation42_spill] sm:$0xff] }
  0x79   : > { %v395_v23 = vmul.f32 %v2229_v42, %v387_v27  ;;  %v396_v36 = vmul.f32 %v383_v12, %v378_v61  ;;  %v461_v56 = vrot.slane %v1740_v60, %v1543_v34  ;;  %v397_v50 = vmul.f32 %v387_v27, %v379_v26  ;;  %v417_v12 = vld [vmem:[#allocation2 + $0x180] sm:$0xf]  ;;  %v2232_v61 = vld [vmem:[#allocation37_spill] sm:$0xff] }
  0x7a   : > { %v398_v1 = vadd.f32 %v388_v0, %v359_v40  ;;  %v399_v54 = vadd.f32 %v389_v20, %v360_v58  ;;  %v465_v33 = vrot.slane %v1743_v8, %v1543_v34  ;;  %v400_v57 = vadd.f32 %v390_v47, %v361_v49  ;;  %v418_v20 = vld [vmem:[#allocation2 + $0x188] sm:$0xf]  ;;  %v2233_v40 = vld [vmem:[#allocation38_spill] sm:$0xff]  ;;  %v2235_v49 = vld [vmem:[#allocation40_spill] sm:$0xff] }
  0x7b   : > { %v427_v19 = vmul.f32 %v2230_v37, %v422_v15  ;;  %v428_v9 = vmul.f32 %v2231_v17, %v426_v10  ;;  %v429_v2 = vmul.f32 %v1695_v4, %v422_v15  ;;  %v401_v24 = vadd.f32 %v391_v28, %v362_v18  ;;  %v2234_v8 = vld [vmem:[#allocation39_spill] sm:$0xff] }
  0x7c   : > { %v402_v29 = vadd.f32 %v392_v16, %v363_v53  ;;  %v403_v43 = vadd.f32 %v393_v13, %v364_v31  ;;  %v430_v32 = vmul.f32 %v2232_v61, %v426_v10  ;;  %v404_v60 = vadd.f32 %v394_v22, %v365_v52  ;;  %v2237_v13 = vld [vmem:[#allocation41_spill] sm:$0xff]  ;;  %v456_v22 = vld [vmem:[#allocation2 + $0x1d0] sm:$0xf] }
  0x7d   : > { %v405_v26 = vadd.f32 %v395_v23, %v366_v3  ;;  %v406_v27 = vadd.f32 %v396_v36, %v367_v5  ;;  %v431_v58 = vmul.f32 %v2233_v40, %v422_v15  ;;  %v407_v34 = vadd.f32 %v397_v50, %v368_v14  ;;  %v2238_v23 = vld [vmem:[#allocation43_spill] sm:$0xff] }
  0x7e   : > { %v432_v47 = vmul.f32 %v2234_v8, %v426_v10  ;;  %v433_v0 = vmul.f32 %v2235_v49, %v422_v15  ;;  %v434_v42 = vmul.f32 %v2236_v25, %v426_v10  ;;  %v435_v4 = vmul.f32 %v422_v15, %v417_v12  ;;  %v1917_v15 = vld [vmem:[%s2100_s3 + $0x30] sm:$0xff] }
  0x7f   : > { %v437_v18 = vadd.f32 %v427_v19, %v398_v1  ;;  %v438_v53 = vadd.f32 %v428_v9, %v399_v54  ;;  %v439_v31 = vadd.f32 %v429_v2, %v400_v57  ;;  %v436_v28 = vmul.f32 %v426_v10, %v418_v20  ;;  %v890_v20 = vld [vmem:[%s2100_s3 + $0x48] sm:$0xf]  ;;  %v1131_v8 = vld [vmem:[%s2100_s3 + $0x70] sm:$0xff] }
  0x80   : > { %v440_v16 = vadd.f32 %v430_v32, %v401_v24  ;;  %v466_v52 = vmul.f32 %v2237_v13, %v461_v56  ;;  %v467_v5 = vmul.f32 %v1716_v30, %v465_v33  ;;  %v441_v3 = vadd.f32 %v431_v58, %v402_v29  ;;  %v457_v30 = vld [vmem:[#allocation2 + $0x1d8] sm:$0xf] }
  0x81   : > { %v468_v14 = vmul.f32 %v1720_v46, %v461_v56  ;;  %v469_v36 = vmul.f32 %v2238_v23, %v465_v33  ;;  %v470_v50 = vmul.f32 %v1730_v41, %v461_v56  ;;  %v442_v10 = vadd.f32 %v432_v47, %v403_v43  ;;  %v889_v41 = vld [vmem:[%s2100_s3 + $0x40] sm:$0xf] }
  0x82   : > { %v443_v1 = vadd.f32 %v433_v0, %v404_v60  ;;  %v444_v54 = vadd.f32 %v434_v42, %v405_v26  ;;  %v471_v57 = vmul.f32 %v1732_v45, %v465_v33  ;;  %v472_v37 = vmul.f32 %v1735_v55, %v461_v56  ;;  %v1127_v55 = vld [vmem:[%s2100_s3 + $0x50] sm:$0xff] }
  0x83   : > { %v476_v19 = vadd.f32 %v466_v52, %v437_v18  ;;  %v477_v17 = vadd.f32 %v467_v5, %v438_v53  ;;  %v478_v46 = vadd.f32 %v468_v14, %v439_v31  ;;  %v445_v9 = vadd.f32 %v435_v4, %v406_v27  ;;  %v2239_v4 = vld [vmem:[#allocation17_spill] sm:$0xff]  ;;  %v1133_v53 = vld [vmem:[%s2100_s3 + $0x80] sm:$0xff]  ;;  %v1135_v31 = vld [vmem:[%s2100_s3 + $0x90] sm:$0xf] }
  0x84   : > { %v473_v2 = vmul.f32 %v1737_v44, %v465_v33  ;;  %v474_v24 = vmul.f32 %v461_v56, %v456_v22  ;;  %v479_v29 = vadd.f32 %v469_v36, %v440_v16  ;;  %v897_v43 = vmul.f32 %v1844_v35, %v1917_v15  ;;  %v1935_v44 = vld [vmem:[%s2100_s3 + $0x58] sm:$0xff]  ;;  %v1129_v56 = vld [vmem:[%s2100_s3 + $0x60] sm:$0xff] }
  0x85   : > { %v912_v45 = vadd.f32 %v1831_v62, %v1823_v11  ;;  %v480_v12 = vadd.f32 %v470_v50, %v441_v3  ;;  %1221 = vtanh.f32 %v476_v19  ;;  %v446_v61 = vadd.f32 %v436_v28, %v407_v34  ;;  %v1943_v11 = vld [vmem:[%s2100_s3 + $0x68] sm:$0xff]  ;;  %v1948_v62 = vld [vmem:[%s2100_s3 + $0x38] sm:$0xff]  ;;  %v2241_v16 = vld [vmem:[#allocation14_spill] sm:$0xff] }
  0x86   : > { %v475_v32 = vmul.f32 %v465_v33, %v457_v30  ;;  %v481_v60 = vadd.f32 %v471_v57, %v442_v10  ;;  %1223 = vtanh.f32 %v477_v17  ;;  %v899_v33 = vmul.f32 %v1876_v38, %v889_v41  ;;  %v1136_v28 = vld [vmem:[%s2100_s3 + $0x98] sm:$0xf]  ;;  %v1990_v3 = vld [vmem:[%s2100_s3 + $0x88] sm:$0xff] }
  0x87   : > { %v902_v26 = vadd.f32 %v1873_v6, %v1871_v7  ;;  %v482_v27 = vadd.f32 %v472_v37, %v443_v1  ;;  %1225 = vtanh.f32 %v478_v46  ;;  %v483_v40 = vadd.f32 %v473_v2, %v444_v54  ;;  %v2242_v10 = vld [vmem:[#allocation11_spill] sm:$0xff] }
  0x88   : > { %v484_v58 = vadd.f32 %v474_v24, %v445_v9  ;;  %1227 = vtanh.f32 %v479_v29  ;;  %v941_v34 = vmul.f32 %v1778_v63, %v1127_v55  ;;  %v942_v47 = vmul.f32 %v1784_v39, %v1935_v44  ;;  %v1970_v63 = vld [vmem:[%s2100_s3 + $0x78] sm:$0xff]  ;;  %v2243_v19 = vld [vmem:[#allocation15_spill] sm:$0xff]  ;;  %v2244_v24 = vld [vmem:[#allocation10_spill] sm:$0xff] }
  0x89   : > { %1229 = vtanh.f32 %v480_v12  ;;  %v943_v7 = vmul.f32 %v1799_v51, %v1129_v56  ;;  %v944_v6 = vmul.f32 %v1810_v59, %v1943_v11  ;;  %v898_v49 = vmul.f32 %v1859_v48, %v1948_v62  ;;  %v2240_v59 = vld [vmem:[#allocation13_spill] sm:$0xff] }
  0x8a   : > { %v485_v0 = vadd.f32 %v475_v32, %v446_v61  ;;  %1231 = vtanh.f32 %v481_v60  ;;  %v900_v25 = vmul.f32 %v1883_v21, %v890_v20  ;;  %v903_v42 = vadd.f32 %v902_v26, %v897_v43  ;;  %v2246_v60 = vld [vmem:[#allocation18_spill] sm:$0xff] }
  0x8b   : > { %v913_v39 = vadd.f32 %v912_v45, %v2239_v4  ;;  %1233 = vtanh.f32 %v482_v27  ;;  %v904_v51 = vsel %vm519_vm0, %v899_v33, 0.0  ;;  %v945_v18 = vmul.f32 %v2240_v59, %v1131_v8 }
  0x8c   : > { %1235 = vtanh.f32 %v483_v40  ;;  %v946_v13 = vmul.f32 %v2241_v16, %v1970_v63  ;;  %v951_v52 = vadd.f32 %v943_v7, %v941_v34  ;;  %v962_v5 = vadd.f32 %v944_v6, %v942_v47  ;;  %v1124_v7 = vld [vmem:[%s2100_s3 + $0x90] sm:$0xf] }
  0x8d   : > { %1237 = vtanh.f32 %v484_v58  ;;  %v1992_v14 = vadd.f32 %v904_v51, %v903_v42  ;;  %v914_v23 = vadd.f32 %v913_v39, %v898_v49  ;;  %v915_v36 = vsel %vm519_vm0, %v900_v25, 0.0  ;;  %v505_v49 = vld [vmem:[%s2100_s3 + $0x48] sm:$0xf] }
  0x8e   : > { %1239 = vtanh.f32 %v485_v0  ;;  %v947_v54 = vmul.f32 %v1844_v35, %v1133_v53  ;;  %v949_v57 = vmul.f32 %v1876_v38, %v1135_v31  ;;  %v950_v30 = vmul.f32 %v1883_v21, %v1136_v28  ;;  %v2245_v38 = vld [vmem:[#allocation12_spill] sm:$0xff] }
  0x8f   : > { %v1222_v22 = vpop.eup %1221  ;;  %v948_v46 = vmul.f32 %v1859_v48, %v1990_v3  ;;  %v952_v41 = vadd.f32 %v951_v52, %v945_v18  ;;  %v963_v9 = vadd.f32 %v962_v5, %v946_v13  ;;  %v906_v35 = vrot.slane %v1992_v14, 4  ;;  %v1125_v52 = vld [vmem:[%s2100_s3 + $0x98] sm:$0xf] }
  0x90   : > { %v1224_v50 = vpop.eup %1223  ;;  %v506_v1 = vmul.f32 %v1222_v22, %v2242_v10  ;;  %v558_v43 = vmul.f32 %v1222_v22, %v1127_v55  ;;  %v916_v61 = vadd.f32 %v915_v36, %v914_v23  ;;  %v954_v27 = vsel %vm519_vm0, %v949_v57, 0.0  ;;  %v504_v55 = vld [vmem:[%s2100_s3 + $0x40] sm:$0xf] }
  0x91   : > { %v1226_v37 = vpop.eup %1225  ;;  %v507_v17 = vmul.f32 %v1224_v50, %v2243_v19  ;;  %v965_v48 = vsel %vm519_vm0, %v950_v30, 0.0  ;;  %v953_v34 = vadd.f32 %v952_v41, %v947_v54  ;;  %v964_v47 = vadd.f32 %v963_v9, %v948_v46 }
  0x92   : > { %v1228_v2 = vpop.eup %1227  ;;  %v508_v29 = vmul.f32 %v1226_v37, %v2244_v24  ;;  %v560_v45 = vmul.f32 %v1226_v37, %v1129_v56  ;;  %v2247_v56 = vld [vmem:[#allocation16_spill] sm:$0xff]  ;;  %v559_v18 = vmul.f32 %v1224_v50, %v1935_v44  ;;  %v917_v22 = vrot.slane %v916_v61, 4 }
  0x93   : > { %v1230_v12 = vpop.eup %1229  ;;  %v509_v32 = vmul.f32 %v1228_v2, %v2245_v38  ;;  %v561_v31 = vmul.f32 %v1228_v2, %v1943_v11  ;;  %v955_v36 = vadd.f32 %v954_v27, %v953_v34  ;;  %v966_v10 = vadd.f32 %v965_v48, %v964_v47 }
  0x94   : > { %v1232_v21 = vpop.eup %1231  ;;  %v510_v33 = vmul.f32 %v1230_v12, %v2246_v60  ;;  %v516_v26 = vadd.f32 %v508_v29, %v506_v1  ;;  %v562_v42 = vmul.f32 %v1230_v12, %v1131_v8  ;;  %v568_v4 = vadd.f32 %v560_v45, %v558_v43 }
  0x95   : > { %v1234_v20 = vpop.eup %1233  ;;  %v511_v40 = vmul.f32 %v1232_v21, %v2247_v56  ;;  %v528_v58 = vadd.f32 %v509_v32, %v507_v17  ;;  %v563_v44 = vmul.f32 %v1232_v21, %v1970_v63  ;;  %v579_v19 = vadd.f32 %v561_v31, %v559_v18 }
  0x96   : > { %v1236_v6 = vpop.eup %1235  ;;  %v512_v0 = vmul.f32 %v1234_v20, %v1917_v15  ;;  %v517_v25 = vadd.f32 %v516_v26, %v510_v33  ;;  %v564_v5 = vmul.f32 %v1234_v20, %v1133_v53  ;;  %v569_v50 = vadd.f32 %v568_v4, %v562_v42 }
  0x97   : > { %v1238_v39 = vpop.eup %1237  ;;  %v513_v51 = vmul.f32 %v1236_v6, %v1948_v62  ;;  %v529_v59 = vadd.f32 %v528_v58, %v511_v40  ;;  %v565_v53 = vmul.f32 %v1236_v6, %v1990_v3  ;;  %v580_v9 = vadd.f32 %v579_v19, %v563_v44 }
  0x98   : > { %v1240_v28 = vpop.eup %1239  ;;  %v514_v16 = vmul.f32 %v1238_v39, %v504_v55  ;;  %v518_v13 = vadd.f32 %v517_v25, %v512_v0  ;;  %v566_v15 = vmul.f32 %v1238_v39, %v1124_v7  ;;  %v570_v37 = vadd.f32 %v569_v50, %v564_v5 }
  0x99   : > { %v515_v8 = vmul.f32 %v1240_v28, %v505_v49  ;;  %v530_v23 = vadd.f32 %v529_v59, %v513_v51  ;;  %v567_v54 = vmul.f32 %v1240_v28, %v1125_v52  ;;  %v907_v2 = vadd.f32 %v906_v35, %v1992_v14 }
  0x9a   : > { %v520_v62 = vsel %vm519_vm0, %v514_v16, 0.0  ;;  %v571_v57 = vsel %vm519_vm0, %v566_v15, 0.0  ;;  %v956_v24 = vrot.slane %v955_v36, 4  ;;  %v967_v63 = vrot.slane %v966_v10, 4 }
  0x9b   : > { %v521_v11 = vadd.f32 %v520_v62, %v518_v13  ;;  %v531_v1 = vsel %vm519_vm0, %v515_v8, 0.0  ;;  %v572_v41 = vadd.f32 %v571_v57, %v570_v37  ;;  %v582_v29 = vsel %vm519_vm0, %v567_v54, 0.0 }
  0x9c   : > { %v532_v30 = vadd.f32 %v531_v1, %v530_v23  ;;  %v918_v43 = vadd.f32 %v917_v22, %v916_v61  ;;  %v581_v38 = vadd.f32 %v580_v9, %v565_v53  ;;  %v908_v60 = vrot.slane %v907_v2, 2  ;;  %v2248_v23 = vld [vmem:[#allocation8_spill] sm:$0xff] }
  0x9d   : > { %v522_v17 = vrot.slane %v521_v11, 4  ;;  %v573_v32 = vrot.slane %v572_v41, 4  ;;  %v957_v3 = vadd.f32 %v956_v24, %v955_v36  ;;  %v968_v33 = vadd.f32 %v967_v63, %v966_v10 }
  0x9e   : > { %v533_v46 = vrot.slane %v532_v30, 4  ;;  %v583_v21 = vadd.f32 %v582_v29, %v581_v38  ;;  %v919_v26 = vrot.slane %v918_v43, 2  ;;  %v909_v40 = vadd.f32 %v908_v60, %v907_v2 }
  0x9f   : > { %v523_v45 = vadd.f32 %v522_v17, %v521_v11  ;;  %v574_v55 = vadd.f32 %v573_v32, %v572_v41  ;;  %v958_v14 = vrot.slane %v957_v3, 2  ;;  %v969_v35 = vrot.slane %v968_v33, 2 }
  0xa0   : > { %v534_v12 = vadd.f32 %v533_v46, %v532_v30  ;;  %v584_v20 = vrot.slane %v583_v21, 4  ;;  %v920_v58 = vadd.f32 %v919_v26, %v918_v43  ;;  %v1341_v6 = vmov 1966171168  }
  0xa1   : > { %v524_v27 = vrot.slane %v523_v45, 2  ;;  %v575_v47 = vrot.slane %v574_v55, 2  ;;  %v602_v49 = vunpack.c.l.s4 %v1341_v6  ;;  %v959_v0 = vadd.f32 %v958_v14, %v957_v3 }
  0xa2   : > { %v535_v48 = vrot.slane %v534_v12, 2  ;;  %v585_v56 = vadd.f32 %v584_v20, %v583_v21  ;;  %v970_v25 = vadd.f32 %v969_v35, %v968_v33  ;;  %v910_v42 = vrot.slane %v909_v40, 1 }
  0xa3   : > { %v525_v34 = vadd.f32 %v524_v27, %v523_v45  ;;  %v921_v4 = vrot.slane %v920_v58, 1  ;;  %v576_v59 = vadd.f32 %v575_v47, %v574_v55  ;;  %v603_v31 = vunpack.c.0.s8 %v602_v49 }
  0xa4   : > { %v536_v61 = vadd.f32 %v535_v48, %v534_v12  ;;  %v586_v7 = vrot.slane %v585_v56, 2  ;;  %v960_v28 = vrot.slane %v959_v0, 1  ;;  %v971_v16 = vrot.slane %v970_v25, 1 }
  0xa5   : > { %v526_v39 = vrot.slane %v525_v34, 1  ;;  %v911_v13 = vadd.f32 %v910_v42, %v909_v40  ;;  %v922_v52 = vadd.f32 %v921_v4, %v920_v58  ;;  %v577_v22 = vrot.slane %v576_v59, 1 }
  0xa6   : > { %v537_v51 = vrot.slane %v536_v61, 1  ;;  %v587_v18 = vadd.f32 %v586_v7, %v585_v56  ;;  %v606_v36 = vsub.s32 %v603_v31, %v2248_v23  ;;  %v961_v44 = vadd.f32 %v960_v28, %v959_v0 }
  0xa7   : > { %v527_v5 = vadd.f32 %v526_v39, %v525_v34  ;;  %v972_v50 = vadd.f32 %v971_v16, %v970_v25  ;;  %v578_v30 = vadd.f32 %v577_v22, %v576_v59  ;;  %v2249_v63 = vlaneseq }
  0xa8   : > { %v538_v15 = vadd.f32 %v537_v51, %v536_v61  ;;  %v588_v8 = vrot.slane %v587_v18, 1 }
  0xa9   : > { %vm2037_vm1 = vcmp.lt.s32.totalorder %v2249_v63, 256 }
  0xaa   : > { %v589_v53 = vadd.f32 %v588_v8, %v587_v18 }
  0xb7   : > { %v927_v62 = vpop.permute.xlu1 %926  ;;  %v543_v10 = vpop.permute.xlu0 %542 }
  0xb8   : > { %v929_v11 = vadd.f32 %v927_v62, %v911_v13  ;;  %v930_v1 = vadd.f32 %v927_v62, %v922_v52  ;;  %v545_v54 = vadd.f32 %v543_v10, %v527_v5  ;;  %v546_v57 = vadd.f32 %v543_v10, %v538_v15 }
  0xba   : > { %v983_v37 = vcombine.low %v929_v11, %v930_v1  ;;  %v600_v19 = vcombine.low %v545_v54, %v546_v57 }
  0xbb   : > { %v977_v17 = vpop.permute.xlu1 %976  ;;  %v594_v46 = vpop.permute.xlu0 %593 }
  0xbc   : > { %v990_v41 = vrot.slane %v983_v37, %v606_v36  ;;  %v607_v9 = vrot.slane %v600_v19, %v606_v36  ;;  %v979_v2 = vadd.f32 %v977_v17, %v961_v44  ;;  %v980_v24 = vadd.f32 %v977_v17, %v972_v50 }
  0xbd   : > { %v596_v43 = vadd.f32 %v594_v46, %v578_v30  ;;  %v597_v45 = vadd.f32 %v594_v46, %v589_v53 }
  0xbe   : > { %v997_v12 = vrot.slane %v990_v41, %v606_v36  ;;  %v614_v38 = vrot.slane %v607_v9, %v606_v36  ;;  %v1003_v32 = vcombine.low %v979_v2, %v980_v24 }
  0xbf   : > { %v623_v21 = vcombine.low %v596_v43, %v597_v45 }
  0xc0   : > { %v1010_v60 = vrot.slane %v1003_v32, %v606_v36  ;;  %620 = vst.msk [vmem:[%s233_s7] ss:$2 sm:$0x3] %vm2037_vm1, %v614_v38  ;;  %1137 = vst.msk [vmem:[%s233_s7 + $0x4] ss:$2 sm:$0x3] %vm2037_vm1, %v997_v12 }
  0xc1   : > { %v630_v3 = vrot.slane %v623_v21, %v606_v36 }
  0xc2   : > { %v1017_v33 = vrot.slane %v1010_v60, %v606_v36 }
  0xc3   : > { %v637_v26 = vrot.slane %v630_v3, %v606_v36 }
  0xc4   : > { %1138 = vst.msk [vmem:[%s233_s7 + $0x5] ss:$2 sm:$0x3] %vm2037_vm1, %v1017_v33 }
  0xc5   : > { %1126 = vst.msk [vmem:[%s233_s7 + $0x1] ss:$2 sm:$0x3] %vm2037_vm1, %v637_v26 }
  0xc6   : > { %1282 = shalt.err (!%p1279_p7)
}
  0xc7   : > { %s1283_s25 = scalar_lea.hbm %s2049_s13, 128  ;;  %s1287_s8 = scalar_lea.hbm %s2102_s5, 256 }
  0xc8   : > { %p1284_p8 = scmp.ne.s32.totalorder %s2049_s13, %s1283_s25  ;;  %p1288_p1 = scmp.lt.u32.totalorder %s2049_s13, %s2102_s5 }
  0xc9   : > { %p1289_p0 = scmp.lt.u32.totalorder %s1287_s8, %s1283_s25  ;;  %p1291_p6 = scmp.lt.u32.totalorder %s1283_s25, %s2049_s13 }
  0xca   : > { %p1285_p11 = pnand %p1284_p8, %p2252_p9 }
  0xcb   : > { %p1290_p5 = por %p1289_p0, %p1288_p1 }
  0xcc   : > { %p1286_p13 = pneg %p1285_p11 }
  0xcd   : > { %p1292_p10 = por %p1291_p6, %p1290_p5 }
  0xcf   : > { %p1293_p12 = pnand %p1292_p10, %p1286_p13 }
  0xd1   : > { %1296 = shalt.err (!%p1293_p12)
}
  0xd2   : > { %1149 = dma.vmem_to_hbm [thread:$0]  (%p2252_p9), %s2051_s10, 128, %s2049_s13, %s1022_s22  }
  0xd3 PF: > { %p1161_p2 = scmp.ge.s32.totalorder %s1335_s21, 2  ;;  %s1048_s7 = sand.u32 1, %s1323_s18  }
  0xd4   : > { %p2253_p3 = scmp.ne.s32.totalorder %s2153_s29, 0  ;;  %s1049_s30 = scalar_lea.sflag [#allocation4], %s1048_s7 }
  0xd6   : > { %p1156_p4 = pnand %p1161_p2, %p2253_p3 }
  0xd8   : > { %1318 = dma.done.wait (!%p1156_p4), %s1049_s30, 128  }
  0xd9   : > { %1320 = vsyncadd (!%p1156_p4), %s1049_s30, 4294967168  ;;  %p16_p7 = scmp.ge.s32.totalorder %s1398_s24, 4   ;;  %s2254_s18 = smov %s1327_s19 }
  0xda   : > { %s2255_s19 = smov %s1331_s20  ;;  %s2256_s20 = smov %s1409_s27 }
  0xdb   : > { %s2257_s21 = smov %s1398_s24  ;;  %18 = sbr.rel (!%p16_p7) target bundleno = 4 (0x4), region = 89 }
  0xe2   :  { %1054 = vsyncpa [#allocation3], 1 }
  0xe3   :  { %1056 = vsyncpa [#allocation3 + $0x1], 1 }
  0xe4   :  { %1057 = vsyncpa [#allocation4], 1 }
  0xe5   :  { %1059 = vsyncpa [#allocation4 + $0x1], 1 }

</bundles_post_ra>
